<compile_context>
chip_gen: v5e
topology: v5e:2x2
jax: 0.10.0
libtpu: 0.0.40
codegen_flags: <defaults>
</compile_context>

<pallas_src>
import math

import numpy as np
import jax
import jax.numpy as jnp
from jax import lax
from jax.experimental import pallas as pl
from jax.experimental.pallas import tpu as pltpu

IGNORE_ID = -1

# ---------------- small synthetic configuration ----------------
LLM_INPUT = 64           # llm_input_size
LLM_OUTPUT = 64          # llm_output_size
SPEECH_TOKEN_SIZE = 125  # -> vocab = speech_token_size + 3 = 128
VOCAB = SPEECH_TOKEN_SIZE + 3
INTERN_HIDDEN = 128      # stand-in for InternVL's 4096 hidden size
TEXT_VOCAB = 256
LLM_FFN = 128
TEXT_CHUNK = 20
AUDIO_CHUNK = 75
RATIO = AUDIO_CHUNK / TEXT_CHUNK
SOS_EOS = 0
TASK_ID = 1

MAX_ROW_TILE = 512       # large row tiles amortize per-grid-step overhead


def _round_up(x, m):
    return ((x + m - 1) // m) * m


def _pick_tile(m, max_tile=MAX_ROW_TILE):
    """Row tile: multiple of 16 (bf16 sublane packing), at most max_tile."""
    return min(max_tile, _round_up(max(m, 16), 16))


# --- Pallas kernel 1: fused text-embedding gather + internlm body + project ---
def _embed_intern_proj_kernel(ids_ref, emb_ref, w1_ref, b1_ref, w2_ref, b2_ref,
                              o_ref):
    # one-hot MXU gather from the VMEM-resident embedding table (exact),
    # then tanh(x @ W1 + b1) @ W2 + b2; bf16 MXU inputs, f32 accumulation.
    ids = ids_ref[...]                                            # (tm, 1) i32
    tm = ids.shape[0]
    nvocab = emb_ref.shape[0]
    col = lax.broadcasted_iota(jnp.int32, (tm, nvocab), 1)
    onehot = (col == ids).astype(emb_ref.dtype)                   # (tm, 256) bf16
    x = jnp.dot(onehot, emb_ref[...], preferred_element_type=jnp.float32)
    h = jnp.tanh(jnp.dot(x.astype(w1_ref.dtype), w1_ref[...],
                         preferred_element_type=jnp.float32) + b1_ref[...])
    o = jnp.dot(h.astype(w2_ref.dtype), w2_ref[...],
                preferred_element_type=jnp.float32) + b2_ref[...]
    o_ref[...] = o.astype(o_ref.dtype)                            # bf16 out


def embed_intern_project(ids, params, tm):
    """ids: (Mp, 1) int32, Mp % tm == 0 -> (Mp, LLM_INPUT) bf16."""
    Mp = ids.shape[0]
    H, D = INTERN_HIDDEN, LLM_INPUT
    emb = params["text_embed"].astype(jnp.bfloat16)               # (256, 128)
    w1 = params["intern_w"].astype(jnp.bfloat16)
    b1 = params["intern_b"].reshape(1, H).astype(jnp.float32)
    w2 = params["proj_w"].astype(jnp.bfloat16)
    b2 = params["proj_b"].reshape(1, D).astype(jnp.float32)
    cost = pl.CostEstimate(
        flops=2 * Mp * (TEXT_VOCAB * H + H * H + H * D),
        transcendentals=Mp * H,
        bytes_accessed=Mp * 4 + Mp * D * 2 + (emb.size + w1.size + w2.size) * 2,
    )
    return pl.pallas_call(
        _embed_intern_proj_kernel,
        out_shape=jax.ShapeDtypeStruct((Mp, D), jnp.bfloat16),
        grid=(Mp // tm,),
        in_specs=[
            pl.BlockSpec((tm, 1), lambda i: (i, 0)),
            pl.BlockSpec((TEXT_VOCAB, H), lambda i: (0, 0)),      # resident table
            pl.BlockSpec((H, H), lambda i: (0, 0)),
            pl.BlockSpec((1, H), lambda i: (0, 0)),
            pl.BlockSpec((H, D), lambda i: (0, 0)),
            pl.BlockSpec((1, D), lambda i: (0, 0)),
        ],
        out_specs=pl.BlockSpec((tm, D), lambda i: (i, 0)),
        compiler_params=pltpu.CompilerParams(dimension_semantics=("parallel",)),
        cost_estimate=cost,
    )(ids, emb, w1, b1, w2, b2)


# --- Pallas kernel 2: fused llm.model MLP + llm_decoder + CE loss + accuracy ---
def _mlp_decode_ce_kernel(x_ref, tgt_ref, w1_ref, b1_ref, w23_ref, b23_ref,
                          part_ref):
    # logits = gelu(x@W1+b1) @ (W2@Wdec) + (b2@Wdec+bdec); logits stay in VMEM.
    h1 = jnp.dot(x_ref[...], w1_ref[...],
                 preferred_element_type=jnp.float32) + b1_ref[...]
    h1 = jax.nn.gelu(h1)
    logits = jnp.dot(h1.astype(w23_ref.dtype), w23_ref[...],
                     preferred_element_type=jnp.float32) + b23_ref[...]  # (tm, V)

    tgt = tgt_ref[...]                                            # (tm, 1) i32
    tm, V = logits.shape
    valid = tgt != IGNORE_ID
    valid_f = valid.astype(jnp.float32)
    safe_tgt = jnp.where(valid, tgt, 0)

    col = lax.broadcasted_iota(jnp.int32, (tm, V), 1)
    onehot = (col == safe_tgt).astype(jnp.float32)

    m = jnp.max(logits, axis=-1, keepdims=True)
    shifted = logits - m
    lse = jnp.log(jnp.sum(jnp.exp(shifted), axis=-1, keepdims=True))
    logp_t = jnp.sum((shifted - lse) * onehot, axis=-1, keepdims=True)

    # lsm_weight = 0.0 (module default) -> label-smoothing loss reduces to NLL.
    loss_sum = jnp.sum(-logp_t * valid_f)
    denom = jnp.sum(valid_f)

    # argmax (first max index) for th_accuracy.
    is_max = logits == m
    idx = jnp.where(is_max, col, V)
    pred = jnp.min(idx, axis=-1, keepdims=True)
    correct = jnp.sum((pred == safe_tgt).astype(jnp.float32) * valid_f)

    # Lane-dense per-tile partials (loss/denom/correct in sublane 0, lanes 0..2);
    # final 3-scalar reduce is a tiny XLA sum -> row grid stays fully parallel.
    sub = lax.broadcasted_iota(jnp.int32, (8, V), 0)
    lane = lax.broadcasted_iota(jnp.int32, (8, V), 1)
    vals = jnp.where(lane == 0, loss_sum,
                     jnp.where(lane == 1, denom,
                               jnp.where(lane == 2, correct, 0.0)))
    part_ref[...] = jnp.where(sub == 0, vals, 0.0)


def mlp_decode_ce(x_bf16, targets, params, tm):
    """x_bf16: (Mp, LLM_INPUT) bf16, targets: (Mp, 1) int32, Mp % tm == 0.

    Returns (loss_sum, denom, correct) as f32 scalars.
    """
    Mp, D = x_bf16.shape
    F, V = LLM_FFN, VOCAB
    w1 = params["llm_w1"].astype(jnp.bfloat16)
    b1 = params["llm_b1"].reshape(1, F).astype(jnp.float32)
    # No nonlinearity between W2 and the decoder -> precompose in f32, cast once.
    w23 = (params["llm_w2"] @ params["dec_w"]).astype(jnp.bfloat16)       # (F, V)
    b23 = (params["llm_b2"] @ params["dec_w"]
           + params["dec_b"]).reshape(1, V).astype(jnp.float32)
    n_tiles = Mp // tm
    cost = pl.CostEstimate(
        flops=2 * Mp * (D * F + F * V),
        transcendentals=Mp * (F + V),
        bytes_accessed=x_bf16.size * 2 + Mp * 4
        + (w1.size + w23.size) * 2 + n_tiles * 8 * V * 4,
    )
    partials = pl.pallas_call(
        _mlp_decode_ce_kernel,
        out_shape=jax.ShapeDtypeStruct((n_tiles * 8, V), jnp.float32),
        grid=(n_tiles,),
        in_specs=[
            pl.BlockSpec((tm, D), lambda i: (i, 0)),
            pl.BlockSpec((tm, 1), lambda i: (i, 0)),
            pl.BlockSpec((D, F), lambda i: (0, 0)),
            pl.BlockSpec((1, F), lambda i: (0, 0)),
            pl.BlockSpec((F, V), lambda i: (0, 0)),
            pl.BlockSpec((1, V), lambda i: (0, 0)),
        ],
        out_specs=pl.BlockSpec((8, V), lambda i: (i, 0)),
        compiler_params=pltpu.CompilerParams(dimension_semantics=("parallel",)),
        cost_estimate=cost,
    )(x_bf16, targets, w1, b1, w23, b23)
    sums = jnp.sum(partials, axis=0)          # (128,) tiny XLA reduce
    return sums[0], sums[1], sums[2]


# ---------------- parameters (deterministic, synthetic) ----------------
def build_params(key):
    ks = jax.random.split(key, 12)
    n = lambda k, s: (0.02 * jax.random.normal(k, s)).astype(jnp.float32)
    return {
        # TODO(synk): pretrained InternVL-8B replaced by a synthetic embedding +
        # single fused Pallas (embed-gather -> tanh-linear -> project) stand-in.
        "text_embed": n(ks[0], (TEXT_VOCAB, INTERN_HIDDEN)),
        "intern_w": n(ks[1], (INTERN_HIDDEN, INTERN_HIDDEN)),
        "intern_b": n(ks[2], (INTERN_HIDDEN,)),
        "proj_w": n(ks[3], (INTERN_HIDDEN, LLM_INPUT)),       # intern_project
        "proj_b": n(ks[4], (LLM_INPUT,)),
        "llm_embedding": n(ks[5], (2, LLM_INPUT)),            # sos_eos / task_id
        "speech_embedding": n(ks[6], (VOCAB, LLM_INPUT)),
        # TODO(synk): pretrained Qwen2 llm.model replaced by a synthetic
        # 2-layer per-token MLP body (attention_mask not consumed).
        "llm_w1": n(ks[7], (LLM_INPUT, LLM_FFN)),
        "llm_b1": n(ks[8], (LLM_FFN,)),
        "llm_w2": n(ks[9], (LLM_FFN, LLM_OUTPUT)),
        "llm_b2": n(ks[10], (LLM_OUTPUT,)),
        "dec_w": n(ks[11], (LLM_OUTPUT, VOCAB)),              # llm_decoder
        "dec_b": jnp.zeros((VOCAB,), jnp.float32),
    }


# ---------------- host-side glue replicating the PyTorch logic ----------------
def interleave_tokens(text_len, audio_len, text_chunk, audio_chunk):
    ratio = RATIO
    if text_len < text_chunk:
        text_chunk, audio_chunk = text_len, int(text_len * ratio)
    if audio_len / text_len < RATIO:
        ratio = audio_len / text_len
        audio_chunk = math.floor(text_chunk * ratio) - 1
    text_segments, audio_segments = [], []
    text_pos, audio_pos = 0, 0
    while text_len >= text_chunk and audio_len >= audio_chunk:
        text_segments.append((text_pos, text_pos + text_chunk))
        audio_segments.append((audio_pos, audio_pos + audio_chunk))
        text_pos, audio_pos = text_pos + text_chunk, audio_pos + audio_chunk
        text_len -= text_chunk
        audio_len -= audio_chunk
    if text_len > 0 and audio_len > 0:
        last_audio_len = int(text_len * ratio)
        text_segments.append((text_pos, text_pos + text_len))
        audio_segments.append((audio_pos, audio_pos + last_audio_len))
        text_pos, audio_pos = text_pos + text_len, audio_pos + last_audio_len
    return text_segments, audio_segments, audio_pos


def qwen2lm_forward(params, batch):
    # Integer inputs only are touched host-side (as the reference does via
    # .item()/.tolist()); all float tensors stay on device end-to-end.
    text_token = jnp.asarray(batch["text_token"]).astype(jnp.int32)   # (B, L)
    text_token_len = np.asarray(batch["text_token_len"])              # (B,)
    speech_token_dev = jnp.asarray(batch["speech_token"]).astype(jnp.int32)
    speech_token = np.asarray(batch["speech_token"])                  # host ints
    speech_token_len = np.asarray(batch["speech_token_len"])
    B, L = text_token.shape
    T = speech_token.shape[1]
    D = LLM_INPUT

    # ---- fused text-embedding gather + internlm body + intern_project ----
    M_text = B * L
    tm_t = _pick_tile(M_text)
    Mp_text = _round_up(M_text, tm_t)
    ids = jnp.zeros((Mp_text, 1), jnp.int32).at[:M_text, 0].set(
        text_token.reshape(-1))
    text_all = embed_intern_project(ids, params, tm_t)       # (Mp_text, D) bf16
    # Reference drops the last hidden position before projecting; the projection
    # is per-token, so we simply never gather the last position of a sequence
    # (no [:, :-1, :] slice / reshape materialization of text_all needed).
    text_token_len = text_token_len - 1

    # ---- speech_embedding lookup in bf16 (device) ----
    speech_emb = jnp.take(params["speech_embedding"].astype(jnp.bfloat16),
                          speech_token_dev, axis=0)          # (B, T, D) bf16

    # ---- lm_target (plain + streaming) + interleave segments (host ints) ----
    lm_targets, stream_targets, segments = [], [], []
    for i in range(B):
        tl, sl = int(text_token_len[i]), int(speech_token_len[i])
        lm_targets.append([IGNORE_ID] * (1 + tl)
                          + speech_token[i, :sl].tolist()
                          + [SPEECH_TOKEN_SIZE])
        ts, aus, apos = interleave_tokens(tl, sl, TEXT_CHUNK, AUDIO_CHUNK)
        segments.append((ts, aus, apos))
        st = []
        for t_seg, a_seg in zip(ts, aus):
            st += [IGNORE_ID] * (t_seg[1] - t_seg[0])
            st += speech_token[i, a_seg[0]:a_seg[1]].tolist()
        st += [IGNORE_ID] + speech_token[i, apos:sl].tolist() + [SPEECH_TOKEN_SIZE]
        stream_targets.append(st)

    # ---- lm_input packing as a bf16 device gather from a source row table ----
    # source rows: 0 = zero pad row, 1 = sos_eos, 2 = task_id,
    #              3 + i*L + j            = text_all row (batch i, pos j), j < len_i
    #              3 + Mp_text + i*T + j  = speech_emb[i, j]
    TEXT_OFF = 3
    SPEECH_OFF = 3 + Mp_text
    text_idx = lambda i, j: TEXT_OFF + i * L + j
    speech_idx = lambda i, j: SPEECH_OFF + i * T + j

    plain_rows, stream_rows = [], []
    for i in range(B):
        tl, sl = int(text_token_len[i]), int(speech_token_len[i])
        plain_rows.append([1] + [text_idx(i, j) for j in range(tl)]
                          + [2] + [speech_idx(i, j) for j in range(sl)])
        ts, aus, apos = segments[i]
        srows = [1]
        for t_seg, a_seg in zip(ts, aus):
            srows += [text_idx(i, j) for j in range(t_seg[0], t_seg[1])]
            srows += [speech_idx(i, j) for j in range(a_seg[0], a_seg[1])]
        srows += [2] + [speech_idx(i, j) for j in range(apos, sl)]
        stream_rows.append(srows)

    all_rows = plain_rows + stream_rows
    all_targets = lm_targets + stream_targets
    NB = 2 * B
    S = max(len(r) for r in all_rows)
    M_tok = NB * S
    tm = _pick_tile(M_tok)
    Mp = _round_up(M_tok, tm)            # token slab padded to an exact tile grid

    gather_idx = np.zeros((Mp,), dtype=np.int32)       # 0 -> zero (pad) row
    lm_target = np.full((Mp, 1), IGNORE_ID, dtype=np.int32)
    for i in range(NB):
        r = np.asarray(all_rows[i], dtype=np.int32)
        t = np.asarray(all_targets[i], dtype=np.int32)
        gather_idx[i * S: i * S + r.shape[0]] = r
        lm_target[i * S: i * S + t.shape[0], 0] = t

    emb_bf16 = params["llm_embedding"].astype(jnp.bfloat16)
    src = jnp.concatenate([
        jnp.zeros((1, D), jnp.bfloat16),
        emb_bf16[SOS_EOS:SOS_EOS + 1],
        emb_bf16[TASK_ID:TASK_ID + 1],
        text_all,                                  # flat bf16 (Mp_text, D)
        speech_emb.reshape(B * T, D),
    ], axis=0)
    lm_input = jnp.take(src, jnp.asarray(gather_idx), axis=0)   # (Mp, D) bf16

    # attention_mask from lm_input_len exists in the reference; the synthetic
    # per-token llm.model stand-in does not consume it (padding handled by the
    # IGNORE_ID mask inside the fused loss kernel).

    # ---- fused llm.model body + llm_decoder + criterion_ce + th_accuracy ----
    loss_sum, denom, correct = mlp_decode_ce(
        lm_input, jnp.asarray(lm_target), params, tm)
    # all-IGNORE_ID guard: reference would produce NaN; we return 0 instead.
    denom = jnp.maximum(denom, 1.0)
    loss = loss_sum / denom
    acc = correct / denom
    return {"loss": loss, "acc": acc}


# ---------------- main ----------------
if __name__ == "__main__":
    key = jax.random.PRNGKey(0)
    pkey, k1, k2 = jax.random.split(key, 3)
    params = build_params(pkey)

    B, L, T = 2, 8, 24
    text_token = jax.random.randint(k1, (B, L), 0, TEXT_VOCAB, dtype=jnp.int32)
    speech_token = jax.random.randint(k2, (B, T), 0, SPEECH_TOKEN_SIZE,
                                      dtype=jnp.int32)
    batch = {
        "text_token": text_token,
        "text_token_len": np.array([8, 6], dtype=np.int32),
        "speech_token": speech_token,
        "speech_token_len": np.array([24, 18], dtype=np.int32),
    }

    out = qwen2lm_forward(params, batch)
    jax.block_until_ready((out["loss"], out["acc"]))
    assert np.isfinite(float(out["loss"])) and 0.0 <= float(out["acc"]) <= 1.0
    print("KERNEL_OK")
</pallas_src>

<mosaic_0001>
module attributes {stable_mosaic.version = 11 : i64} {
  func.func @_embed_intern_proj_kernel(%arg0: i32, %arg1: memref<16x1xi32, #tpu.memory_space<vmem>>, %arg2: memref<256x128xbf16, #tpu.memory_space<vmem>>, %arg3: memref<128x128xbf16, #tpu.memory_space<vmem>>, %arg4: memref<1x128xf32, #tpu.memory_space<vmem>>, %arg5: memref<128x64xbf16, #tpu.memory_space<vmem>>, %arg6: memref<1x64xf32, #tpu.memory_space<vmem>>, %arg7: memref<16x64xbf16, #tpu.memory_space<vmem>>) attributes {dimension_semantics = [#tpu.dimension_semantics<parallel>], iteration_bounds = array<i64: 1>, scalar_prefetch = 0 : i64, scratch_operands = 0 : i64, tpu.core_type = #tpu.core_type<tc>, window_params = [{transform_indices = @transform_0, window_bounds = array<i64: 16, 1>}, {pipeline_mode = #tpu.pipeline_mode<synchronous>, transform_indices = @transform_1, window_bounds = array<i64: 256, 128>}, {pipeline_mode = #tpu.pipeline_mode<synchronous>, transform_indices = @transform_2, window_bounds = array<i64: 128, 128>}, {pipeline_mode = #tpu.pipeline_mode<synchronous>, transform_indices = @transform_3, window_bounds = array<i64: 1, 128>}, {pipeline_mode = #tpu.pipeline_mode<synchronous>, transform_indices = @transform_4, window_bounds = array<i64: 128, 64>}, {pipeline_mode = #tpu.pipeline_mode<synchronous>, transform_indices = @transform_5, window_bounds = array<i64: 1, 64>}, {transform_indices = @transform_6, window_bounds = array<i64: 16, 64>}]} {
    %c0 = arith.constant 0 : index
    %c0_0 = arith.constant 0 : index
    %0 = vector.load %arg1[%c0, %c0_0] : memref<16x1xi32, #tpu.memory_space<vmem>>, vector<16x1xi32>
    %1 = tpu.iota {dimensions = array<i32: 1>} : vector<16x256xi32>
    %2 = vector.broadcast %0 : vector<16x1xi32> to vector<16x256xi32>
    %3 = arith.cmpi eq, %1, %2 : vector<16x256xi32>
    %4 = arith.extui %3 : vector<16x256xi1> to vector<16x256xi32>
    %5 = arith.sitofp %4 : vector<16x256xi32> to vector<16x256xf32>
    %6 = arith.truncf %5 : vector<16x256xf32> to vector<16x256xbf16>
    %c0_1 = arith.constant 0 : index
    %c0_2 = arith.constant 0 : index
    %7 = vector.load %arg2[%c0_1, %c0_2] : memref<256x128xbf16, #tpu.memory_space<vmem>>, vector<256x128xbf16>
    %cst = arith.constant dense<0.000000e+00> : vector<16x128xf32>
    %8 = tpu.matmul %6, %7, %cst {dimension_numbers = #tpu.dot_dimension_numbers<[1], [0], [0], [1], [0, 0, 1, 1], [], []>} : vector<16x256xbf16>, vector<256x128xbf16>, vector<16x128xf32> -> vector<16x128xf32>
    %9 = arith.truncf %8 : vector<16x128xf32> to vector<16x128xbf16>
    %c0_3 = arith.constant 0 : index
    %c0_4 = arith.constant 0 : index
    %10 = vector.load %arg3[%c0_3, %c0_4] : memref<128x128xbf16, #tpu.memory_space<vmem>>, vector<128x128xbf16>
    %cst_5 = arith.constant dense<0.000000e+00> : vector<16x128xf32>
    %11 = tpu.matmul %9, %10, %cst_5 {dimension_numbers = #tpu.dot_dimension_numbers<[1], [0], [0], [1], [0, 0, 1, 1], [], []>} : vector<16x128xbf16>, vector<128x128xbf16>, vector<16x128xf32> -> vector<16x128xf32>
    %c0_6 = arith.constant 0 : index
    %c0_7 = arith.constant 0 : index
    %12 = vector.load %arg4[%c0_6, %c0_7] : memref<1x128xf32, #tpu.memory_space<vmem>>, vector<1x128xf32>
    %13 = vector.broadcast %12 : vector<1x128xf32> to vector<16x128xf32>
    %14 = arith.addf %11, %13 : vector<16x128xf32>
    %15 = math.tanh %14 : vector<16x128xf32>
    %16 = arith.truncf %15 : vector<16x128xf32> to vector<16x128xbf16>
    %c0_8 = arith.constant 0 : index
    %c0_9 = arith.constant 0 : index
    %17 = vector.load %arg5[%c0_8, %c0_9] : memref<128x64xbf16, #tpu.memory_space<vmem>>, vector<128x64xbf16>
    %cst_10 = arith.constant dense<0.000000e+00> : vector<16x64xf32>
    %18 = tpu.matmul %16, %17, %cst_10 {dimension_numbers = #tpu.dot_dimension_numbers<[1], [0], [0], [1], [0, 0, 1, 1], [], []>} : vector<16x128xbf16>, vector<128x64xbf16>, vector<16x64xf32> -> vector<16x64xf32>
    %c0_11 = arith.constant 0 : index
    %c0_12 = arith.constant 0 : index
    %19 = vector.load %arg6[%c0_11, %c0_12] : memref<1x64xf32, #tpu.memory_space<vmem>>, vector<1x64xf32>
    %20 = vector.broadcast %19 : vector<1x64xf32> to vector<16x64xf32>
    %21 = arith.addf %18, %20 : vector<16x64xf32>
    %22 = arith.truncf %21 : vector<16x64xf32> to vector<16x64xbf16>
    %c0_13 = arith.constant 0 : index
    %c0_14 = arith.constant 0 : index
    %23 = vector.load %arg7[%c0_13, %c0_14] : memref<16x64xbf16, #tpu.memory_space<vmem>>, vector<16x64xbf16>
    tpu.vector_store %arg7[%c0_13, %c0_14], %22 {strides = array<i32>} : memref<16x64xbf16, #tpu.memory_space<vmem>>, vector<16x64xbf16>,
    return
  }
  func.func @transform_0(%arg0: i32) -> (i32, i32) {
    %c0_i32 = arith.constant 0 : i32
    %c0_i32_0 = arith.constant 0 : i32
    return %arg0, %c0_i32 : i32, i32
  }
  func.func @transform_1(%arg0: i32) -> (i32, i32) {
    %c0_i32 = arith.constant 0 : i32
    %c0_i32_0 = arith.constant 0 : i32
    %c0_i32_1 = arith.constant 0 : i32
    return %c0_i32, %c0_i32_0 : i32, i32
  }
  func.func @transform_2(%arg0: i32) -> (i32, i32) {
    %c0_i32 = arith.constant 0 : i32
    %c0_i32_0 = arith.constant 0 : i32
    %c0_i32_1 = arith.constant 0 : i32
    return %c0_i32, %c0_i32_0 : i32, i32
  }
  func.func @transform_3(%arg0: i32) -> (i32, i32) {
    %c0_i32 = arith.constant 0 : i32
    %c0_i32_0 = arith.constant 0 : i32
    %c0_i32_1 = arith.constant 0 : i32
    return %c0_i32, %c0_i32_0 : i32, i32
  }
  func.func @transform_4(%arg0: i32) -> (i32, i32) {
    %c0_i32 = arith.constant 0 : i32
    %c0_i32_0 = arith.constant 0 : i32
    %c0_i32_1 = arith.constant 0 : i32
    return %c0_i32, %c0_i32_0 : i32, i32
  }
  func.func @transform_5(%arg0: i32) -> (i32, i32) {
    %c0_i32 = arith.constant 0 : i32
    %c0_i32_0 = arith.constant 0 : i32
    %c0_i32_1 = arith.constant 0 : i32
    return %c0_i32, %c0_i32_0 : i32, i32
  }
  func.func @transform_6(%arg0: i32) -> (i32, i32) {
    %c0_i32 = arith.constant 0 : i32
    %c0_i32_0 = arith.constant 0 : i32
    return %arg0, %c0_i32 : i32, i32
  }
}

</mosaic_0001>

<bundles_post_ra>
// kernel: tpu_custom_call.1
= control target key start
LH: loop header
LB: loop body
LE: loop exit
PB: predicated region body
PF: predicated region fallthrough
CT: control target
= control target key end

     0   :  { %11 = vsyncpa [#allocation3], 0  ;;  %s759_s0 = inlined_call_operand.vmem [shape: s32[16,1], index: 0, kind: input, shape index: {}]   ;;  %s760_s1 = inlined_call_operand.hbm [shape: bf16[256,128], index: 1, kind: input, shape index: {}]   ;;  %s761_s2 = inlined_call_operand.vmem [shape: bf16[128,128], index: 2, kind: input, shape index: {}]   ;;  %s762_s3 = inlined_call_operand.vmem [shape: f32[1,128], index: 3, kind: input, shape index: {}]   ;;  %s763_s4 = inlined_call_operand.vmem [shape: bf16[128,64], index: 4, kind: input, shape index: {}]   ;;  %s764_s5 = inlined_call_operand.vmem [shape: f32[1,64], index: 5, kind: input, shape index: {}]   ;;  %s765_s6 = inlined_call_operand.hbm [shape: bf16[16,64], index: 6, kind: output, shape index: {}]  }
   0x1   :  { %12 = vsyncpa [#allocation4], 0  ;;  %s19_s23 = sshll.u32 %s760_s1, 4  ;;  %s646_s24 = smov [#allocation2]   ;;  %s20_s23 = int_to_ptr.hbm [resolvable:$true] %s19_s23 }
   0x2   :  { %s21_s25 = sshll.u32 %s646_s24, 4  ;;  %s647_s26 = smov 64   ;;  %s22_s25 = int_to_ptr.vmem [resolvable:$true] %s21_s25 }
   0x3   :  { %s648_s27 = smov 4  }
   0x4   :  { %27 = dma.hbm_to_vmem [thread:$0]  %s20_s23, 2048, %s22_s25, [#allocation3], %s647_s26, %s647_s26, %s648_s27  }
   0x5   :  { %642 = dma.done.wait [#allocation3], 2048  }
   0x6   :  { %643 = vsyncadd [#allocation3], 4294965248  ;;  %v649_v0 = vmov 0   ;;  %v40_v1 = vld [vmem:[%s759_s0] sm:$0xff]  ;;  %v556_v2 = vld [vmem:[#allocation2 + $0x38] sm:$0xff]  ;;  %v42_v24 = vlaneseq  ;;  %vm391_vm6 = vcmask 519168  }
   0x7   :  { %587 = vset.pattern.permute.xlu0 %v649_v0  ;;  %v564_v3 = vld [vmem:[#allocation2 + $0x78] sm:$0xff]  ;;  %193 = vmatpush.bf16.msra.mxu0 %v556_v2  ;;  %v555_v4 = vld [vmem:[#allocation2 + $0x30] sm:$0xff]  ;;  %v41_v6 = vld [vmem:[%s759_s0 + $0x8] sm:$0xff]  ;;  %v650_v29 = vmov 1.0|1.0   ;;  %s400_s19 = sshll.u32 %s765_s6, 4  ;;  %s401_s19 = int_to_ptr.hbm [resolvable:$true] %s400_s19 }
   0x8   :  { %46 = vperm.xlu0 %587, %v40_v1   ;;  %207 = vmatpush.bf16.msra.mxu1 %v564_v3  ;;  %v563_v5 = vld [vmem:[#allocation2 + $0x70] sm:$0xff]  ;;  %v554_v7 = vld [vmem:[#allocation2 + $0x28] sm:$0xff]  ;;  %v553_v9 = vld [vmem:[#allocation2 + $0x20] sm:$0xff]  ;;  %v43_v26 = vand.u32 127, %v42_v24 }
   0x9   :  { %v562_v8 = vld [vmem:[#allocation2 + $0x68] sm:$0xff]  ;;  %v561_v10 = vld [vmem:[#allocation2 + $0x60] sm:$0xff]  ;;  %v552_v11 = vld [vmem:[#allocation2 + $0x18] sm:$0xff] }
   0xa   :  { %v560_v12 = vld [vmem:[#allocation2 + $0x58] sm:$0xff]  ;;  %v551_v13 = vld [vmem:[#allocation2 + $0x10] sm:$0xff]  ;;  %v550_v15 = vld [vmem:[#allocation2 + $0x8] sm:$0xff]  ;;  %v44_v27 = vadd.s32 128, %v43_v26 }
   0xb   :  { %194 = vmatpush.bf16.msra.mxu0 %v555_v4  ;;  %v559_v14 = vld [vmem:[#allocation2 + $0x50] sm:$0xff]  ;;  %v558_v16 = vld [vmem:[#allocation2 + $0x48] sm:$0xff]  ;;  %v549_v17 = vld [vmem:[#allocation2] sm:$0xff] }
   0xc   :  { %208 = vmatpush.bf16.msra.mxu1 %v563_v5  ;;  %v557_v18 = vld [vmem:[#allocation2 + $0x40] sm:$0xff]  ;;  %v572_v19 = vld [vmem:[%s761_s2 + $0x38] sm:$0xff]  ;;  %v571_v20 = vld [vmem:[%s761_s2 + $0x30] sm:$0xff] }
   0xd   :  { %290 = vmatpush.bf16.msra.mxu2 %v572_v19  ;;  %v570_v21 = vld [vmem:[%s761_s2 + $0x28] sm:$0xff]  ;;  %v569_v22 = vld [vmem:[%s761_s2 + $0x20] sm:$0xff]  ;;  %v568_v23 = vld [vmem:[%s761_s2 + $0x18] sm:$0xff] }
   0xe   :  { %v567_v30 = vld [vmem:[%s761_s2 + $0x10] sm:$0xff]  ;;  %v566_v31 = vld [vmem:[%s761_s2 + $0x8] sm:$0xff]  ;;  %v565_v32 = vld [vmem:[%s761_s2] sm:$0xff] }
   0xf   :  { %195 = vmatpush.bf16.msra.mxu0 %v554_v7  ;;  %v580_v33 = vld [vmem:[%s763_s4 + $0x38] sm:$0xff]  ;;  %v579_v34 = vld [vmem:[%s763_s4 + $0x30] sm:$0xff]  ;;  %v578_v35 = vld [vmem:[%s763_s4 + $0x28] sm:$0xff] }
  0x10   :  { %49 = vperm.xlu0 %587, %v41_v6   ;;  %209 = vmatpush.bf16.msra.mxu1 %v562_v8  ;;  %v577_v43 = vld [vmem:[%s763_s4 + $0x20] sm:$0xff]  ;;  %v576_v44 = vld [vmem:[%s763_s4 + $0x18] sm:$0xff]  ;;  %v575_v45 = vld [vmem:[%s763_s4 + $0x10] sm:$0xff] }
  0x11   :  { %291 = vmatpush.bf16.msra.mxu2 %v571_v20  ;;  %375 = vmatpush.bf16.msra.mxu3 %v580_v33  ;;  %v574_v46 = vld [vmem:[%s763_s4 + $0x8] sm:$0xff]  ;;  %v573_v47 = vld [vmem:[%s763_s4] sm:$0xff] }
  0x12   :  { %v588_v49 = vld [vmem:[%s762_s3] ss:$0 sm:$0xff]  ;;  %s651_s3 = smov [#allocation5]  }
  0x13   :  { %196 = vmatpush.bf16.msra.mxu0 %v553_v9  ;;  %v589_v56 = vld [vmem:[%s764_s5] ss:$0 sm:$0xff]  ;;  %s398_s4 = sshll.u32 %s651_s3, 4  ;;  %s399_s4 = int_to_ptr.vmem [resolvable:$true] %s398_s4 }
  0x14   :  { %210 = vmatpush.bf16.msra.mxu1 %v561_v10 }
  0x15   :  { %292 = vmatpush.bf16.msra.mxu2 %v570_v21  ;;  %376 = vmatpush.bf16.msra.mxu3 %v579_v34 }
  0x17   :  { %197 = vmatpush.bf16.msra.mxu0 %v552_v11 }
  0x18   :  { %211 = vmatpush.bf16.msra.mxu1 %v560_v12 }
  0x19   :  { %293 = vmatpush.bf16.msra.mxu2 %v569_v22  ;;  %377 = vmatpush.bf16.msra.mxu3 %v578_v35 }
  0x1b   :  { %198 = vmatpush.bf16.msra.mxu0 %v551_v13 }
  0x1c   :  { %212 = vmatpush.bf16.msra.mxu1 %v559_v14 }
  0x1d   :  { %294 = vmatpush.bf16.msra.mxu2 %v568_v23  ;;  %378 = vmatpush.bf16.msra.mxu3 %v577_v43 }
  0x1f   :  { %199 = vmatpush.bf16.msra.mxu0 %v550_v15 }
  0x20   :  { %213 = vmatpush.bf16.msra.mxu1 %v558_v16 }
  0x21   :  { %295 = vmatpush.bf16.msra.mxu2 %v567_v30  ;;  %379 = vmatpush.bf16.msra.mxu3 %v576_v44 }
  0x23   :  { %200 = vmatpush.bf16.msra.mxu0 %v549_v17 }
  0x24   :  { %214 = vmatpush.bf16.msra.mxu1 %v557_v18 }
  0x25   :  { %296 = vmatpush.bf16.msra.mxu2 %v566_v31  ;;  %380 = vmatpush.bf16.msra.mxu3 %v575_v45 }
  0x29   :  { %297 = vmatpush.bf16.msra.mxu2 %v565_v32  ;;  %381 = vmatpush.bf16.msra.mxu3 %v574_v46 }
  0x2d   :  { %382 = vmatpush.bf16.msra.mxu3 %v573_v47 }
  0x7a   :  { %v47_v25 = vpop.permute.xlu0 %46 }
  0x7b   :  { %vm51_vm0 = vcmp.eq.s32.totalorder %v43_v26, %v47_v25  ;;  %vm52_vm3 = vcmp.eq.s32.totalorder %v44_v27, %v47_v25 }
  0x82   :  { %v50_v28 = vpop.permute.xlu0 %49 }
  0x83   :  { %vm53_vm1 = vcmp.eq.s32.totalorder %v43_v26, %v50_v28  ;;  %vm54_vm2 = vcmp.eq.s32.totalorder %v44_v27, %v50_v28 }
  0x84   :  { %vm481_vm4 = vmpackc.low %vm53_vm1, %vm51_vm0 }
  0x85   :  { %vm483_vm5 = vmpackc.low %vm54_vm2, %vm52_vm3  ;;  %482 = vmatmul.msk.bf16.vlgmr.msra.gmra.mxu0 %vm481_vm4, %v650_v29 }
  0x86   :  { %484 = vmatmul.msk.bf16.vlgmr.msra.gmra.mxu1 %vm483_vm5, %v650_v29 }
 0x102   :  { %v202_v36 = vpop.f32.mrf.mxu0 }
 0x103   :  { %v216_v37 = vpop.f32.mrf.mxu1 }
 0x104   :  { %v217_v40 = vadd.f32 %v216_v37, %v202_v36 }
 0x10a   :  { %v204_v38 = vpop.f32.mrf.mxu0 }
 0x10b   :  { %v218_v39 = vpop.f32.mrf.mxu1 }
 0x10c   :  { %v219_v41 = vadd.f32 %v218_v39, %v204_v38 }
 0x10e   :  { %v221_v42 = vpack.c.bf16 %v219_v41, %v217_v40 }
 0x110   :  { %298 = vmatmul.bf16.vlgmr.msra.gmra.mxu2 %v221_v42 }
 0x193   :  { %v299_v48 = vpop.f32.mrf.mxu2 }
 0x194   :  { %v300_v50 = vadd.f32 %v588_v49, %v299_v48 }
 0x196   :  { %590 = vtanh.f32 %v300_v50 }
 0x19b   :  { %v301_v51 = vpop.f32.mrf.mxu2 }
 0x19c   :  { %v302_v52 = vadd.f32 %v588_v49, %v301_v51  ;;  %v591_v53 = vpop.eup %590 }
 0x19e   :  { %592 = vtanh.f32 %v302_v52 }
 0x1a4   :  { %v593_v54 = vpop.eup %592 }
 0x1a5   :  { %v306_v55 = vpack.c.bf16 %v593_v54, %v591_v53 }
 0x1a7   :  { %383 = vmatmul.bf16.vlgmr.msra.gmra.mxu3 %v306_v55 }
 0x22a   :  { %v384_v57 = vpop.f32.mrf.mxu3 }
 0x22b   :  { %v385_v58 = vadd.f32 %v589_v56, %v384_v57 }
 0x22d   :  { %v389_v59 = vpack.c.bf16 %v385_v58, %v385_v58 }
 0x22f   :  { %392 = vst.msk [vmem:[#allocation5] sm:$0xf] %vm391_vm6, %v389_v59 }
 0x232   :  { %v386_v60 = vpop.f32.mrf.mxu3 }
 0x233   :  { %v387_v61 = vadd.f32 %v589_v56, %v386_v60 }
 0x235   :  { %v390_v62 = vpack.c.bf16 %v387_v61, %v387_v61 }
 0x237   :  { %393 = vst.msk [vmem:[#allocation5 + $0x4] sm:$0xf] %vm391_vm6, %v390_v62 }
 0x238   :  { %406 = dma.vmem_to_hbm [thread:$0]  %s399_s4, 128, %s401_s19, [#allocation4], %s647_s26, %s647_s26, %s648_s27  }
 0x239   :  { %644 = dma.done.wait [#allocation4], 128  }
 0x23a   :  { %645 = vsyncadd [#allocation4], 4294967168 }
 0x23b   :  { %411 = vsyncpa [#allocation3], 1 }
 0x23c   :  { %412 = vsyncpa [#allocation4], 1 }

</bundles_post_ra>
